<compile_context>
chip_gen: v7x
topology: tpu7x:2x2x1
jax: 0.10.0
libtpu: 0.0.40
codegen_flags: <defaults>
</compile_context>

<pallas_src>
import math

import jax
import jax.numpy as jnp
from jax.experimental import pallas as pl
from jax.experimental.pallas import tpu as pltpu


def _build_pe(max_len: int, d_model: int) -> jnp.ndarray:
    """Deterministic sinusoidal positional-encoding buffer, shape (max_len, 1, d_model)."""
    position = jnp.arange(max_len, dtype=jnp.float32)[:, None]            # (max_len, 1)
    div_term = jnp.exp(
        jnp.arange(0, d_model, 2, dtype=jnp.float32) * (-math.log(10000.0) / d_model)
    )                                                                      # (d_model//2,)
    angles = position * div_term                                           # (max_len, d_model//2)
    pe = jnp.zeros((max_len, d_model), dtype=jnp.float32)
    pe = pe.at[:, 0::2].set(jnp.sin(angles))
    pe = pe.at[:, 1::2].set(jnp.cos(angles))
    return pe[:, None, :]                                                  # (max_len, 1, d_model)


def _pe_add_kernel(x_ref, pe_ref, o_ref):
    # x_ref / pe_ref / o_ref: (1, TILE_S, d_model) VMEM tiles.
    # Do the add in f32 (handles bf16 x + f32 pe on v5e cleanly), cast on store.
    o_ref[...] = (x_ref[...].astype(jnp.float32) + pe_ref[...]).astype(o_ref.dtype)


def _pick_seq_tile(seq_len: int, d_model: int, itemsize: int,
                   max_tile_bytes: int = 1 << 20, max_rows: int = 1024) -> int:
    """Largest multiple-of-8 divisor of seq_len within a ~1 MiB / 1024-row budget.

    Falls back to the full seq_len (allowed by the (8,128) block rule since it
    equals the full array dim) when no such divisor exists.
    """
    row_bytes = max(1, d_model * itemsize)
    cap = min(seq_len, max_rows, max(8, max_tile_bytes // row_bytes))
    t = (cap // 8) * 8
    while t >= 8:
        if seq_len % t == 0:
            return t
        t -= 8
    return seq_len


def positional_encoding_forward(x: jnp.ndarray, pe: jnp.ndarray) -> jnp.ndarray:
    """x: (seq_len, batch, d_model); pe: (max_len, 1, d_model). Returns (seq_len, batch, d_model)."""
    seq_len, batch, d_model = x.shape
    itemsize = jnp.dtype(x.dtype).itemsize

    # Layout plumbing (wrapper-side): batch-first so blocks are lane-dense.
    x_t = jnp.transpose(x, (1, 0, 2))                                  # (B, S, D)
    pe_t = pe[:seq_len, 0, :][None, :, :].astype(jnp.float32)          # (1, S, D)

    tile_s = _pick_seq_tile(seq_len, d_model, itemsize)
    grid = (seq_len // tile_s, batch)   # batch innermost -> pe tile reused (no re-DMA)

    cost = pl.CostEstimate(
        flops=batch * seq_len * d_model,
        transcendentals=0,
        bytes_accessed=2 * batch * seq_len * d_model * itemsize + seq_len * d_model * 4,
    )

    out_t = pl.pallas_call(
        _pe_add_kernel,
        out_shape=jax.ShapeDtypeStruct((batch, seq_len, d_model), x.dtype),
        grid=grid,
        in_specs=[
            pl.BlockSpec((1, tile_s, d_model), lambda s, b: (b, s, 0)),   # x
            pl.BlockSpec((1, tile_s, d_model), lambda s, b: (0, s, 0)),   # pe (broadcast over batch)
        ],
        out_specs=pl.BlockSpec((1, tile_s, d_model), lambda s, b: (b, s, 0)),
        input_output_aliases={0: 0},   # reuse x's (transposed) buffer for the output
        compiler_params=pltpu.CompilerParams(
            dimension_semantics=("parallel", "parallel"),
            vmem_limit_bytes=32 * 1024 * 1024,
        ),
        cost_estimate=cost,
    )(x_t, pe_t)

    # Back to the module's seq-first convention. Dropout in eval mode is identity.
    return jnp.transpose(out_t, (1, 0, 2))


if __name__ == "__main__":
    # Small shapes; d_model chosen as a multiple of 128 so the lane dim is dense.
    d_model = 128
    max_len = 64
    seq_len = 16
    batch = 4

    key = jax.random.PRNGKey(0)
    x = jax.random.normal(key, (seq_len, batch, d_model), dtype=jnp.float32)

    pe = _build_pe(max_len, d_model)

    fwd = jax.jit(positional_encoding_forward)
    out = fwd(x, pe)
    out = jax.block_until_ready(out)

    # Sanity check against a plain-JAX reference.
    ref = x + pe[:seq_len]
    assert out.shape == (seq_len, batch, d_model)
    assert jnp.allclose(out, ref, atol=1e-6, rtol=1e-6)

    print("KERNEL_OK")
</pallas_src>

<mosaic_0001>
module attributes {stable_mosaic.version = 11 : i64} {
  func.func @_pe_add_kernel(%arg0: i32, %arg1: i32, %arg2: memref<1x16x128xf32, #tpu.memory_space<vmem>>, %arg3: memref<1x16x128xf32, #tpu.memory_space<vmem>>, %arg4: memref<1x16x128xf32, #tpu.memory_space<vmem>>) attributes {dimension_semantics = [#tpu.dimension_semantics<parallel>, #tpu.dimension_semantics<parallel>], iteration_bounds = array<i64: 1, 4>, scalar_prefetch = 0 : i64, scratch_operands = 0 : i64, tpu.core_type = #tpu.core_type<tc>, window_params = [{transform_indices = @transform_0, window_bounds = array<i64: 1, 16, 128>}, {transform_indices = @transform_1, window_bounds = array<i64: 1, 16, 128>}, {transform_indices = @transform_2, window_bounds = array<i64: 1, 16, 128>}]} {
    %c0 = arith.constant 0 : index
    %c0_0 = arith.constant 0 : index
    %c0_1 = arith.constant 0 : index
    %0 = vector.load %arg2[%c0, %c0_0, %c0_1] : memref<1x16x128xf32, #tpu.memory_space<vmem>>, vector<1x16x128xf32>
    %c0_2 = arith.constant 0 : index
    %c0_3 = arith.constant 0 : index
    %c0_4 = arith.constant 0 : index
    %1 = vector.load %arg3[%c0_2, %c0_3, %c0_4] : memref<1x16x128xf32, #tpu.memory_space<vmem>>, vector<1x16x128xf32>
    %2 = arith.addf %0, %1 : vector<1x16x128xf32>
    %c0_5 = arith.constant 0 : index
    %c0_6 = arith.constant 0 : index
    %c0_7 = arith.constant 0 : index
    %3 = vector.load %arg4[%c0_5, %c0_6, %c0_7] : memref<1x16x128xf32, #tpu.memory_space<vmem>>, vector<1x16x128xf32>
    tpu.vector_store %arg4[%c0_5, %c0_6, %c0_7], %2 {strides = array<i32>} : memref<1x16x128xf32, #tpu.memory_space<vmem>>, vector<1x16x128xf32>,
    return
  }
  func.func @transform_0(%arg0: i32, %arg1: i32) -> (i32, i32, i32) {
    %c0_i32 = arith.constant 0 : i32
    %c0_i32_0 = arith.constant 0 : i32
    return %arg1, %arg0, %c0_i32 : i32, i32, i32
  }
  func.func @transform_1(%arg0: i32, %arg1: i32) -> (i32, i32, i32) {
    %c0_i32 = arith.constant 0 : i32
    %c0_i32_0 = arith.constant 0 : i32
    %c0_i32_1 = arith.constant 0 : i32
    return %c0_i32, %arg0, %c0_i32_0 : i32, i32, i32
  }
  func.func @transform_2(%arg0: i32, %arg1: i32) -> (i32, i32, i32) {
    %c0_i32 = arith.constant 0 : i32
    %c0_i32_0 = arith.constant 0 : i32
    return %arg1, %arg0, %c0_i32 : i32, i32, i32
  }
}

</mosaic_0001>

<bundles_post_ra>
// kernel: positional_encoding_forward.1
= control target key start
LH: loop header
LB: loop body
LE: loop exit
PB: predicated region body
PF: predicated region fallthrough
CT: control target
= control target key end

     0   :  { %s392_s9 = smov 0   ;;  %s394_s10 = smov 0   ;;  %s419_s0 = inlined_call_operand.vmem [shape: f32[4,16,128], index: 0, kind: input, shape index: {}, may-alias: {0,2}]   ;;  %s420_s1 = inlined_call_operand.vmem [shape: f32[1,16,128], index: 1, kind: input, shape index: {}]   ;;  %s421_s2 = inlined_call_operand.vmem [shape: f32[4,16,128], index: 2, kind: output, shape index: {}, may-alias: {0,2}]  }
   0x1   :  { %s396_s11 = smov 0  }
   0x2 LB: > { %s21_s12 = sadd.s32 1, %s371_s10  ;;  %p320_p0 = scmp.ge.s32.totalorder %s375_s11, 1  ;;  %s375_s11 = sphi %s396_s11, %s12_s11   ;;  %s371_s10 = sphi %s394_s10, %s423_s10   ;;  %s367_s9 = sphi %s392_s9, %s422_s9  }
   0x3   : > { %p22_p1 = scmp.ge.s32.totalorder %s21_s12, 4  ;;  %p144_p2 = scmp.lt.s32.totalorder %s375_s11, 5 }
   0x5   : > { %s425_s12 = smov (%p22_p1, %s21_s12), 0  ;;  %p145_p3 = pnand %p320_p0, %p144_p2 }
   0x6   : > { %p180_p4 = scmp.lt.s32.totalorder (!%p145_p3), %s367_s9, 3  ;;  %v207_v0 = vld [vmem:[%s420_s1] sm:$0xff] (!%p145_p3)  ;;  %v208_v1 = vld [vmem:[%s420_s1 + $0x8] sm:$0xff] (!%p145_p3) }
   0x7   : > { %148 = sbr.rel (%p145_p3) target bundleno = 21 (0x15), region = 28 }
   0xe   : > { %s427_s9 = smov (!%p180_p4, %s367_s9), 3 }
   0xf   : > { %s327_s13 = sshll.u32 %s427_s9, 4 }
  0x10   : > { %s187_s20 = scalar_lea.vmem %s419_s0, %s327_s13  ;;  %s203_s23 = scalar_lea.vmem %s421_s2, %s327_s13 }
  0x11   : > { %v205_v2 = vld [vmem:[%s187_s20] sm:$0xff]  ;;  %v206_v3 = vld [vmem:[%s187_s20 + $0x8] sm:$0xff] }
  0x12   : > { %v209_v4 = vadd.f32 %v207_v0, %v205_v2  ;;  %v210_v5 = vadd.f32 %v208_v1, %v206_v3 }
  0x14   : > { %211 = vst [vmem:[%s203_s23] sm:$0xff] %v209_v4  ;;  %212 = vst [vmem:[%s203_s23 + $0x8] sm:$0xff] %v210_v5 }
  0x15 PF: > { %s12_s11 = sadd.s32 1, %s375_s11   ;;  %s422_s9 = smov %s371_s10 }
  0x16   : > { %p9_p5 = scmp.ge.s32.totalorder %s12_s11, 6   ;;  %s423_s10 = smov %s425_s12 }
  0x18   :  { %11 = sbr.rel (!%p9_p5) target bundleno = 2 (0x2), region = 61 }

</bundles_post_ra>
